<compile_context>
chip_gen: v6e
topology: v6e:2x2x1
jax: 0.10.0
libtpu: 0.0.40
codegen_flags: <defaults>
</compile_context>

<pallas_src>
import functools

import jax
import jax.numpy as jnp
from jax.experimental import pallas as pl
from jax.experimental.pallas import tpu as pltpu


def _pick_time_tile(seq_len, max_tile):
    """Largest divisor of seq_len that is <= max_tile (keeps the T grid exact)."""
    for cand in range(min(seq_len, max_tile), 0, -1):
        if seq_len % cand == 0:
            return cand
    return 1


def _softmtl_lstm_kernel(x_ref, wih_ref, whh_ref, b_ref, wd_ref, bd_ref,
                         out_ref, pre_ref, h_ref, c_ref, *,
                         time_tile, batch_pad, hidden_size, compute_dtype):
    """One time-tile of the LSTM recurrence; dense head on the final hidden state.

    Grid: (T // time_tile,), axis marked "arbitrary" (serial recurrence).

    x_ref:   (T_tile, B_pad, D)  compute_dtype  (time-major, batch sublane-padded)
    wih_ref: (D, 4H)             compute_dtype
    whh_ref: (H, 4H)             compute_dtype
    b_ref:   (1, 4H)             f32            (b_ih + b_hh)
    wd_ref:  (H, 128)            compute_dtype  (dense weight, zero-padded lanes)
    bd_ref:  (1, 128)            f32            (dense bias,   zero-padded lanes)
    out_ref: (B_pad, 128)        f32            (lane-dense output slab)
    pre_ref: (T_tile, B_pad, 4H) f32 VMEM scratch (per-tile hoisted projection)
    h_ref/c_ref: (B_pad, H)      f32 VMEM scratch (state carried across grid steps)
    """
    H = hidden_size
    t_blk = pl.program_id(0)

    @pl.when(t_blk == 0)
    def _init_state():
        h_ref[...] = jnp.zeros_like(h_ref)
        c_ref[...] = jnp.zeros_like(c_ref)

    # ---- hoisted per-tile input projection: ONE MXU matmul; x read exactly once.
    # Bias is folded in here so the per-step path is just one small matmul + VPU.
    x2 = x_ref[...].reshape(time_tile * batch_pad, -1)            # (T_tile*B_pad, D)
    pre2 = jnp.dot(x2, wih_ref[...], preferred_element_type=jnp.float32) + b_ref[...]
    pre_ref[...] = pre2.reshape(time_tile, batch_pad, 4 * H)

    whh = whh_ref[...]                                            # (H, 4H) compute_dtype
    h0 = h_ref[...]
    c0 = c_ref[...]

    def step(s, carry):
        h, c = carry                                              # f32 state
        # Aligned leading-dim read (B_pad is a sublane multiple) — no masked loads.
        gates = pre_ref[s] + jnp.dot(h.astype(compute_dtype), whh,
                                     preferred_element_type=jnp.float32)
        # 3 transcendental pushes per step instead of 5: evaluate sigmoid/tanh once
        # over the full lane-dense (B_pad, 4H=128) vreg, then lane-slice i/f/g/o
        # (PyTorch gate order [i, f, g, o]).
        sg = jax.nn.sigmoid(gates)
        tg = jnp.tanh(gates)
        i_g = sg[:, 0 * H:1 * H]
        f_g = sg[:, 1 * H:2 * H]
        g_g = tg[:, 2 * H:3 * H]
        o_g = sg[:, 3 * H:4 * H]
        c = f_g * c + i_g * g_g
        h = o_g * jnp.tanh(c)
        return (h, c)

    h_last, c_last = jax.lax.fori_loop(0, time_tile, step, (h0, c0),
                                       unroll=min(time_tile, 8))
    h_ref[...] = h_last
    c_ref[...] = c_last

    @pl.when(t_blk == pl.num_programs(0) - 1)
    def _finalize():
        # dropout: identity in eval mode.  Dense on the last hidden state; the
        # 128-lane output slab keeps the store unmasked (lane-dense).
        out_ref[...] = (jnp.dot(h_last.astype(compute_dtype), wd_ref[...],
                                preferred_element_type=jnp.float32)
                        + bd_ref[...]).astype(out_ref.dtype)


def make_softmtl_forward(lstm_params, dense_params, *, hidden_size, out_size,
                         compute_dtype=jnp.bfloat16, max_time_tile=64,
                         lane_pad=128, sublane_pad=8):
    """Builds a jitted forward for SoftMTLv3.  Weight prep happens ONCE here."""
    w_ih, w_hh, b_ih, b_hh = lstm_params      # (4H, D), (4H, H), (4H,), (4H,)
    w_d, b_d = dense_params                   # (O, H), (O,)
    H, O = hidden_size, out_size

    wih_t = jnp.transpose(w_ih).astype(compute_dtype)              # (D, 4H)
    whh_t = jnp.transpose(w_hh).astype(compute_dtype)              # (H, 4H)
    b_sum = (b_ih + b_hh).astype(jnp.float32).reshape(1, 4 * H)    # (1, 4H)
    wd_pad = jnp.zeros((H, lane_pad), compute_dtype).at[:, :O].set(
        jnp.transpose(w_d).astype(compute_dtype))                  # (H, 128)
    bd_pad = jnp.zeros((1, lane_pad), jnp.float32).at[:, :O].set(
        b_d.astype(jnp.float32).reshape(1, O))                     # (1, 128)

    @jax.jit
    def forward(x_btd, aux=None):                                  # aux unused (as in PyTorch)
        B, T, D = x_btd.shape
        b_pad = max(sublane_pad, ((B + sublane_pad - 1) // sublane_pad) * sublane_pad)
        t_tile = _pick_time_tile(T, max_time_tile)
        n_t = T // t_tile

        # Cast to compute_dtype BEFORE the relayout (halves transpose bandwidth),
        # pad batch to a sublane multiple, then go time-major (T, B_pad, D).
        x_c = x_btd.astype(compute_dtype)
        x_p = jnp.pad(x_c, ((0, b_pad - B), (0, 0), (0, 0)))
        x_tbd = jnp.transpose(x_p, (1, 0, 2))                      # (T, B_pad, D)

        out_slab = pl.pallas_call(
            functools.partial(_softmtl_lstm_kernel, time_tile=t_tile,
                              batch_pad=b_pad, hidden_size=H,
                              compute_dtype=compute_dtype),
            out_shape=jax.ShapeDtypeStruct((b_pad, lane_pad), jnp.float32),
            grid=(n_t,),
            in_specs=[
                pl.BlockSpec((t_tile, b_pad, D), lambda t: (t, 0, 0)),   # stream x over T
                pl.BlockSpec((D, 4 * H), lambda t: (0, 0)),
                pl.BlockSpec((H, 4 * H), lambda t: (0, 0)),
                pl.BlockSpec((1, 4 * H), lambda t: (0, 0)),
                pl.BlockSpec((H, lane_pad), lambda t: (0, 0)),
                pl.BlockSpec((1, lane_pad), lambda t: (0, 0)),
            ],
            out_specs=pl.BlockSpec((b_pad, lane_pad), lambda t: (0, 0)),
            scratch_shapes=[
                pltpu.VMEM((t_tile, b_pad, 4 * H), jnp.float32),   # per-tile projection
                pltpu.VMEM((b_pad, H), jnp.float32),               # h (persists over grid)
                pltpu.VMEM((b_pad, H), jnp.float32),               # c (persists over grid)
            ],
            compiler_params=pltpu.CompilerParams(
                dimension_semantics=("arbitrary",),                # serial recurrence over T
                vmem_limit_bytes=32 * 1024 * 1024),
        )(x_tbd, wih_t, whh_t, b_sum, wd_pad, bd_pad)
        return out_slab[:B, :O]                                    # (B, O)

    return forward


# ---------------------- pure-JAX reference (PyTorch semantics) ----------------------
def _ref_forward(x, lstm_params, dense_params, compute_dtype=jnp.float32):
    w_ih, w_hh, b_ih, b_hh = lstm_params
    w_d, b_d = dense_params
    B = x.shape[0]
    H = w_hh.shape[1]
    w_ih_c = w_ih.astype(compute_dtype)
    w_hh_c = w_hh.astype(compute_dtype)

    def step(carry, x_t):
        h, c = carry
        g = (jnp.dot(x_t.astype(compute_dtype), w_ih_c.T,
                     preferred_element_type=jnp.float32)
             + jnp.dot(h.astype(compute_dtype), w_hh_c.T,
                       preferred_element_type=jnp.float32)
             + b_ih + b_hh)
        i = jax.nn.sigmoid(g[:, 0 * H:1 * H])
        f = jax.nn.sigmoid(g[:, 1 * H:2 * H])
        gg = jnp.tanh(g[:, 2 * H:3 * H])
        o = jax.nn.sigmoid(g[:, 3 * H:4 * H])
        c = f * c + i * gg
        h = o * jnp.tanh(c)
        return (h, c), None

    (h_last, _), _ = jax.lax.scan(
        step,
        (jnp.zeros((B, H), jnp.float32), jnp.zeros((B, H), jnp.float32)),
        jnp.transpose(x.astype(jnp.float32), (1, 0, 2)))
    # dropout: identity in eval; dense on last timestep (dtype-matched operands).
    return (jnp.dot(h_last.astype(compute_dtype),
                    jnp.transpose(w_d).astype(compute_dtype),
                    preferred_element_type=jnp.float32) + b_d)


if __name__ == "__main__":
    # softmtl_cfg
    input_size, hidden_size, out_size = 16, 32, 4
    B, T = 2, 8

    key = jax.random.PRNGKey(0)
    ks = jax.random.split(key, 7)
    s = 1.0 / (hidden_size ** 0.5)

    # LSTM parameters (PyTorch shapes, PyTorch [i, f, g, o] gate order)
    w_ih = jax.random.uniform(ks[0], (4 * hidden_size, input_size), minval=-s, maxval=s,
                              dtype=jnp.float32)
    w_hh = jax.random.uniform(ks[1], (4 * hidden_size, hidden_size), minval=-s, maxval=s,
                              dtype=jnp.float32)
    b_ih = jax.random.uniform(ks[2], (4 * hidden_size,), minval=-s, maxval=s,
                              dtype=jnp.float32)
    b_hh = jax.random.uniform(ks[3], (4 * hidden_size,), minval=-s, maxval=s,
                              dtype=jnp.float32)
    # Dense(hidden_size, out_size)
    w_d = jax.random.uniform(ks[4], (out_size, hidden_size), minval=-s, maxval=s,
                             dtype=jnp.float32)
    b_d = jax.random.uniform(ks[5], (out_size,), minval=-s, maxval=s, dtype=jnp.float32)

    lstm_params = (w_ih, w_hh, b_ih, b_hh)
    dense_params = (w_d, b_d)

    x = jax.random.normal(ks[6], (B, T, input_size), dtype=jnp.float32)

    # ---- strict f32 check against the PyTorch-semantics reference ----
    # max_time_tile=4 forces a 2-step T grid so the streamed state-carry path is
    # actually exercised at these toy sizes.
    fwd_f32 = make_softmtl_forward(lstm_params, dense_params,
                                   hidden_size=hidden_size, out_size=out_size,
                                   compute_dtype=jnp.float32, max_time_tile=4)
    out_f32 = jax.block_until_ready(fwd_f32(x))
    ref_f32 = _ref_forward(x, lstm_params, dense_params, compute_dtype=jnp.float32)
    assert out_f32.shape == (B, out_size)
    assert jnp.allclose(out_f32, ref_f32, atol=1e-4, rtol=1e-4), (
        f"f32 mismatch: max err {jnp.max(jnp.abs(out_f32 - ref_f32))}")

    # ---- bf16-operand (MXU-native) path, checked against a dtype-matched reference ----
    fwd_bf16 = make_softmtl_forward(lstm_params, dense_params,
                                    hidden_size=hidden_size, out_size=out_size,
                                    compute_dtype=jnp.bfloat16, max_time_tile=4)
    out_bf16 = jax.block_until_ready(fwd_bf16(x))
    ref_bf16 = _ref_forward(x, lstm_params, dense_params, compute_dtype=jnp.bfloat16)
    assert out_bf16.shape == (B, out_size)
    assert jnp.allclose(out_bf16, ref_bf16, atol=5e-3, rtol=5e-3), (
        f"bf16 mismatch: max err {jnp.max(jnp.abs(out_bf16 - ref_bf16))}")

    print("KERNEL_OK")
</pallas_src>

<mosaic_0001>
module attributes {stable_mosaic.version = 11 : i64} {
  func.func @_softmtl_lstm_kernel(%arg0: i32, %arg1: memref<4x8x16xf32, #tpu.memory_space<vmem>>, %arg2: memref<16x128xf32, #tpu.memory_space<vmem>>, %arg3: memref<32x128xf32, #tpu.memory_space<vmem>>, %arg4: memref<1x128xf32, #tpu.memory_space<vmem>>, %arg5: memref<32x128xf32, #tpu.memory_space<vmem>>, %arg6: memref<1x128xf32, #tpu.memory_space<vmem>>, %arg7: memref<8x128xf32, #tpu.memory_space<vmem>>, %arg8: memref<4x8x128xf32, #tpu.memory_space<vmem>>, %arg9: memref<8x32xf32, #tpu.memory_space<vmem>>, %arg10: memref<8x32xf32, #tpu.memory_space<vmem>>) attributes {dimension_semantics = [#tpu.dimension_semantics<arbitrary>], iteration_bounds = array<i64: 2>, scalar_prefetch = 0 : i64, scratch_operands = 3 : i64, tpu.core_type = #tpu.core_type<tc>, window_params = [{transform_indices = @transform_0, window_bounds = array<i64: 4, 8, 16>}, {pipeline_mode = #tpu.pipeline_mode<synchronous>, transform_indices = @transform_1, window_bounds = array<i64: 16, 128>}, {pipeline_mode = #tpu.pipeline_mode<synchronous>, transform_indices = @transform_2, window_bounds = array<i64: 32, 128>}, {pipeline_mode = #tpu.pipeline_mode<synchronous>, transform_indices = @transform_3, window_bounds = array<i64: 1, 128>}, {pipeline_mode = #tpu.pipeline_mode<synchronous>, transform_indices = @transform_4, window_bounds = array<i64: 32, 128>}, {pipeline_mode = #tpu.pipeline_mode<synchronous>, transform_indices = @transform_5, window_bounds = array<i64: 1, 128>}, {pipeline_mode = #tpu.pipeline_mode<synchronous>, transform_indices = @transform_6, window_bounds = array<i64: 8, 128>}]} {
    %c0_i32 = arith.constant 0 : i32
    %0 = arith.cmpi eq, %arg0, %c0_i32 : i32
    %1 = arith.extui %0 : i1 to i32
    %c0_i32_0 = arith.constant 0 : i32
    %2 = arith.cmpi ne, %1, %c0_i32_0 : i32
    scf.if %2 {
      %cst_39 = arith.constant 0.000000e+00 : f32
      %100 = vector.broadcast %cst_39 : f32 to vector<8x32xf32>
      %c0_40 = arith.constant 0 : index
      %c0_41 = arith.constant 0 : index
      %101 = vector.load %arg9[%c0_40, %c0_41] : memref<8x32xf32, #tpu.memory_space<vmem>>, vector<8x32xf32>
      tpu.vector_store %arg9[%c0_40, %c0_41], %100 {strides = array<i32>} : memref<8x32xf32, #tpu.memory_space<vmem>>, vector<8x32xf32>,
      %cst_42 = arith.constant 0.000000e+00 : f32
      %102 = vector.broadcast %cst_42 : f32 to vector<8x32xf32>
      %c0_43 = arith.constant 0 : index
      %c0_44 = arith.constant 0 : index
      %103 = vector.load %arg10[%c0_43, %c0_44] : memref<8x32xf32, #tpu.memory_space<vmem>>, vector<8x32xf32>
      tpu.vector_store %arg10[%c0_43, %c0_44], %102 {strides = array<i32>} : memref<8x32xf32, #tpu.memory_space<vmem>>, vector<8x32xf32>,
    } else {
    }
    %c0 = arith.constant 0 : index
    %c0_1 = arith.constant 0 : index
    %c0_2 = arith.constant 0 : index
    %3 = vector.load %arg1[%c0, %c0_1, %c0_2] : memref<4x8x16xf32, #tpu.memory_space<vmem>>, vector<4x8x16xf32>
    %4 = vector.shape_cast %3 : vector<4x8x16xf32> to vector<32x16xf32>
    %c0_3 = arith.constant 0 : index
    %c0_4 = arith.constant 0 : index
    %5 = vector.load %arg2[%c0_3, %c0_4] : memref<16x128xf32, #tpu.memory_space<vmem>>, vector<16x128xf32>
    %cst = arith.constant dense<0.000000e+00> : vector<32x128xf32>
    %6 = tpu.matmul %4, %5, %cst {dimension_numbers = #tpu.dot_dimension_numbers<[1], [0], [0], [1], [0, 0, 1, 1], [], []>} : vector<32x16xf32>, vector<16x128xf32>, vector<32x128xf32> -> vector<32x128xf32>
    %c0_5 = arith.constant 0 : index
    %c0_6 = arith.constant 0 : index
    %7 = vector.load %arg4[%c0_5, %c0_6] : memref<1x128xf32, #tpu.memory_space<vmem>>, vector<1x128xf32>
    %8 = vector.broadcast %7 : vector<1x128xf32> to vector<32x128xf32>
    %9 = arith.addf %6, %8 : vector<32x128xf32>
    %10 = vector.shape_cast %9 : vector<32x128xf32> to vector<4x8x128xf32>
    %c0_7 = arith.constant 0 : index
    %c0_8 = arith.constant 0 : index
    %c0_9 = arith.constant 0 : index
    %11 = vector.load %arg8[%c0_7, %c0_8, %c0_9] : memref<4x8x128xf32, #tpu.memory_space<vmem>>, vector<4x8x128xf32>
    tpu.vector_store %arg8[%c0_7, %c0_8, %c0_9], %10 {strides = array<i32>} : memref<4x8x128xf32, #tpu.memory_space<vmem>>, vector<4x8x128xf32>,
    %c0_10 = arith.constant 0 : index
    %c0_11 = arith.constant 0 : index
    %12 = vector.load %arg3[%c0_10, %c0_11] : memref<32x128xf32, #tpu.memory_space<vmem>>, vector<32x128xf32>
    %c0_12 = arith.constant 0 : index
    %c0_13 = arith.constant 0 : index
    %13 = vector.load %arg9[%c0_12, %c0_13] : memref<8x32xf32, #tpu.memory_space<vmem>>, vector<8x32xf32>
    %c0_14 = arith.constant 0 : index
    %c0_15 = arith.constant 0 : index
    %14 = vector.load %arg10[%c0_14, %c0_15] : memref<8x32xf32, #tpu.memory_space<vmem>>, vector<8x32xf32>
    %c0_i32_16 = arith.constant 0 : i32
    %15 = arith.index_cast %c0_i32_16 : i32 to index
    %c0_17 = arith.constant 0 : index
    %c0_18 = arith.constant 0 : index
    %16 = vector.load %arg8[%15, %c0_17, %c0_18] : memref<4x8x128xf32, #tpu.memory_space<vmem>>, vector<1x8x128xf32>
    %17 = vector.shape_cast %16 : vector<1x8x128xf32> to vector<8x128xf32>
    %cst_19 = arith.constant dense<0.000000e+00> : vector<8x128xf32>
    %18 = tpu.matmul %13, %12, %cst_19 {dimension_numbers = #tpu.dot_dimension_numbers<[1], [0], [0], [1], [0, 0, 1, 1], [], []>} : vector<8x32xf32>, vector<32x128xf32>, vector<8x128xf32> -> vector<8x128xf32>
    %19 = arith.addf %17, %18 : vector<8x128xf32>
    %20 = arith.negf %19 : vector<8x128xf32>
    %21 = math.exp %20 : vector<8x128xf32>
    %cst_20 = arith.constant 1.000000e+00 : f32
    %22 = vector.broadcast %cst_20 : f32 to vector<8x128xf32>
    %23 = arith.addf %22, %21 : vector<8x128xf32>
    %24 = arith.divf %22, %23 : vector<8x128xf32>
    %25 = math.tanh %19 : vector<8x128xf32>
    %26 = vector.extract_strided_slice %24 {offsets = [0, 0], sizes = [8, 32], strides = [1, 1]} : vector<8x128xf32> to vector<8x32xf32>
    %27 = vector.extract_strided_slice %24 {offsets = [0, 32], sizes = [8, 32], strides = [1, 1]} : vector<8x128xf32> to vector<8x32xf32>
    %28 = vector.extract_strided_slice %25 {offsets = [0, 64], sizes = [8, 32], strides = [1, 1]} : vector<8x128xf32> to vector<8x32xf32>
    %29 = vector.extract_strided_slice %24 {offsets = [0, 96], sizes = [8, 32], strides = [1, 1]} : vector<8x128xf32> to vector<8x32xf32>
    %30 = arith.mulf %27, %14 : vector<8x32xf32>
    %31 = arith.mulf %26, %28 : vector<8x32xf32>
    %32 = arith.addf %30, %31 : vector<8x32xf32>
    %33 = math.tanh %32 : vector<8x32xf32>
    %34 = arith.mulf %29, %33 : vector<8x32xf32>
    %c1_i32 = arith.constant 1 : i32
    %35 = arith.index_cast %c1_i32 : i32 to index
    %c0_21 = arith.constant 0 : index
    %c0_22 = arith.constant 0 : index
    %36 = vector.load %arg8[%35, %c0_21, %c0_22] : memref<4x8x128xf32, #tpu.memory_space<vmem>>, vector<1x8x128xf32>
    %37 = vector.shape_cast %36 : vector<1x8x128xf32> to vector<8x128xf32>
    %cst_23 = arith.constant dense<0.000000e+00> : vector<8x128xf32>
    %38 = tpu.matmul %34, %12, %cst_23 {dimension_numbers = #tpu.dot_dimension_numbers<[1], [0], [0], [1], [0, 0, 1, 1], [], []>} : vector<8x32xf32>, vector<32x128xf32>, vector<8x128xf32> -> vector<8x128xf32>
    %39 = arith.addf %37, %38 : vector<8x128xf32>
    %40 = arith.negf %39 : vector<8x128xf32>
    %41 = math.exp %40 : vector<8x128xf32>
    %cst_24 = arith.constant 1.000000e+00 : f32
    %42 = vector.broadcast %cst_24 : f32 to vector<8x128xf32>
    %43 = arith.addf %42, %41 : vector<8x128xf32>
    %44 = arith.divf %42, %43 : vector<8x128xf32>
    %45 = math.tanh %39 : vector<8x128xf32>
    %46 = vector.extract_strided_slice %44 {offsets = [0, 0], sizes = [8, 32], strides = [1, 1]} : vector<8x128xf32> to vector<8x32xf32>
    %47 = vector.extract_strided_slice %44 {offsets = [0, 32], sizes = [8, 32], strides = [1, 1]} : vector<8x128xf32> to vector<8x32xf32>
    %48 = vector.extract_strided_slice %45 {offsets = [0, 64], sizes = [8, 32], strides = [1, 1]} : vector<8x128xf32> to vector<8x32xf32>
    %49 = vector.extract_strided_slice %44 {offsets = [0, 96], sizes = [8, 32], strides = [1, 1]} : vector<8x128xf32> to vector<8x32xf32>
    %50 = arith.mulf %47, %32 : vector<8x32xf32>
    %51 = arith.mulf %46, %48 : vector<8x32xf32>
    %52 = arith.addf %50, %51 : vector<8x32xf32>
    %53 = math.tanh %52 : vector<8x32xf32>
    %54 = arith.mulf %49, %53 : vector<8x32xf32>
    %c2_i32 = arith.constant 2 : i32
    %55 = arith.index_cast %c2_i32 : i32 to index
    %c0_25 = arith.constant 0 : index
    %c0_26 = arith.constant 0 : index
    %56 = vector.load %arg8[%55, %c0_25, %c0_26] : memref<4x8x128xf32, #tpu.memory_space<vmem>>, vector<1x8x128xf32>
    %57 = vector.shape_cast %56 : vector<1x8x128xf32> to vector<8x128xf32>
    %cst_27 = arith.constant dense<0.000000e+00> : vector<8x128xf32>
    %58 = tpu.matmul %54, %12, %cst_27 {dimension_numbers = #tpu.dot_dimension_numbers<[1], [0], [0], [1], [0, 0, 1, 1], [], []>} : vector<8x32xf32>, vector<32x128xf32>, vector<8x128xf32> -> vector<8x128xf32>
    %59 = arith.addf %57, %58 : vector<8x128xf32>
    %60 = arith.negf %59 : vector<8x128xf32>
    %61 = math.exp %60 : vector<8x128xf32>
    %cst_28 = arith.constant 1.000000e+00 : f32
    %62 = vector.broadcast %cst_28 : f32 to vector<8x128xf32>
    %63 = arith.addf %62, %61 : vector<8x128xf32>
    %64 = arith.divf %62, %63 : vector<8x128xf32>
    %65 = math.tanh %59 : vector<8x128xf32>
    %66 = vector.extract_strided_slice %64 {offsets = [0, 0], sizes = [8, 32], strides = [1, 1]} : vector<8x128xf32> to vector<8x32xf32>
    %67 = vector.extract_strided_slice %64 {offsets = [0, 32], sizes = [8, 32], strides = [1, 1]} : vector<8x128xf32> to vector<8x32xf32>
    %68 = vector.extract_strided_slice %65 {offsets = [0, 64], sizes = [8, 32], strides = [1, 1]} : vector<8x128xf32> to vector<8x32xf32>
    %69 = vector.extract_strided_slice %64 {offsets = [0, 96], sizes = [8, 32], strides = [1, 1]} : vector<8x128xf32> to vector<8x32xf32>
    %70 = arith.mulf %67, %52 : vector<8x32xf32>
    %71 = arith.mulf %66, %68 : vector<8x32xf32>
    %72 = arith.addf %70, %71 : vector<8x32xf32>
    %73 = math.tanh %72 : vector<8x32xf32>
    %74 = arith.mulf %69, %73 : vector<8x32xf32>
    %c3_i32 = arith.constant 3 : i32
    %75 = arith.index_cast %c3_i32 : i32 to index
    %c0_29 = arith.constant 0 : index
    %c0_30 = arith.constant 0 : index
    %76 = vector.load %arg8[%75, %c0_29, %c0_30] : memref<4x8x128xf32, #tpu.memory_space<vmem>>, vector<1x8x128xf32>
    %77 = vector.shape_cast %76 : vector<1x8x128xf32> to vector<8x128xf32>
    %cst_31 = arith.constant dense<0.000000e+00> : vector<8x128xf32>
    %78 = tpu.matmul %74, %12, %cst_31 {dimension_numbers = #tpu.dot_dimension_numbers<[1], [0], [0], [1], [0, 0, 1, 1], [], []>} : vector<8x32xf32>, vector<32x128xf32>, vector<8x128xf32> -> vector<8x128xf32>
    %79 = arith.addf %77, %78 : vector<8x128xf32>
    %80 = arith.negf %79 : vector<8x128xf32>
    %81 = math.exp %80 : vector<8x128xf32>
    %cst_32 = arith.constant 1.000000e+00 : f32
    %82 = vector.broadcast %cst_32 : f32 to vector<8x128xf32>
    %83 = arith.addf %82, %81 : vector<8x128xf32>
    %84 = arith.divf %82, %83 : vector<8x128xf32>
    %85 = math.tanh %79 : vector<8x128xf32>
    %86 = vector.extract_strided_slice %84 {offsets = [0, 0], sizes = [8, 32], strides = [1, 1]} : vector<8x128xf32> to vector<8x32xf32>
    %87 = vector.extract_strided_slice %84 {offsets = [0, 32], sizes = [8, 32], strides = [1, 1]} : vector<8x128xf32> to vector<8x32xf32>
    %88 = vector.extract_strided_slice %85 {offsets = [0, 64], sizes = [8, 32], strides = [1, 1]} : vector<8x128xf32> to vector<8x32xf32>
    %89 = vector.extract_strided_slice %84 {offsets = [0, 96], sizes = [8, 32], strides = [1, 1]} : vector<8x128xf32> to vector<8x32xf32>
    %90 = arith.mulf %87, %72 : vector<8x32xf32>
    %91 = arith.mulf %86, %88 : vector<8x32xf32>
    %92 = arith.addf %90, %91 : vector<8x32xf32>
    %93 = math.tanh %92 : vector<8x32xf32>
    %94 = arith.mulf %89, %93 : vector<8x32xf32>
    %c4_i32 = arith.constant 4 : i32
    %c0_33 = arith.constant 0 : index
    %c0_34 = arith.constant 0 : index
    %95 = vector.load %arg9[%c0_33, %c0_34] : memref<8x32xf32, #tpu.memory_space<vmem>>, vector<8x32xf32>
    tpu.vector_store %arg9[%c0_33, %c0_34], %94 {strides = array<i32>} : memref<8x32xf32, #tpu.memory_space<vmem>>, vector<8x32xf32>,
    %c0_35 = arith.constant 0 : index
    %c0_36 = arith.constant 0 : index
    %96 = vector.load %arg10[%c0_35, %c0_36] : memref<8x32xf32, #tpu.memory_space<vmem>>, vector<8x32xf32>
    tpu.vector_store %arg10[%c0_35, %c0_36], %92 {strides = array<i32>} : memref<8x32xf32, #tpu.memory_space<vmem>>, vector<8x32xf32>,
    %c1_i32_37 = arith.constant 1 : i32
    %97 = arith.cmpi eq, %arg0, %c1_i32_37 : i32
    %98 = arith.extui %97 : i1 to i32
    %c0_i32_38 = arith.constant 0 : i32
    %99 = arith.cmpi ne, %98, %c0_i32_38 : i32
    scf.if %99 {
      %c0_39 = arith.constant 0 : index
      %c0_40 = arith.constant 0 : index
      %100 = vector.load %arg5[%c0_39, %c0_40] : memref<32x128xf32, #tpu.memory_space<vmem>>, vector<32x128xf32>
      %cst_41 = arith.constant dense<0.000000e+00> : vector<8x128xf32>
      %101 = tpu.matmul %94, %100, %cst_41 {dimension_numbers = #tpu.dot_dimension_numbers<[1], [0], [0], [1], [0, 0, 1, 1], [], []>} : vector<8x32xf32>, vector<32x128xf32>, vector<8x128xf32> -> vector<8x128xf32>
      %c0_42 = arith.constant 0 : index
      %c0_43 = arith.constant 0 : index
      %102 = vector.load %arg6[%c0_42, %c0_43] : memref<1x128xf32, #tpu.memory_space<vmem>>, vector<1x128xf32>
      %103 = vector.broadcast %102 : vector<1x128xf32> to vector<8x128xf32>
      %104 = arith.addf %101, %103 : vector<8x128xf32>
      %c0_44 = arith.constant 0 : index
      %c0_45 = arith.constant 0 : index
      %105 = vector.load %arg7[%c0_44, %c0_45] : memref<8x128xf32, #tpu.memory_space<vmem>>, vector<8x128xf32>
      tpu.vector_store %arg7[%c0_44, %c0_45], %104 {strides = array<i32>} : memref<8x128xf32, #tpu.memory_space<vmem>>, vector<8x128xf32>,
    } else {
    }
    return
  }
  func.func @transform_0(%arg0: i32) -> (i32, i32, i32) {
    %c0_i32 = arith.constant 0 : i32
    %c0_i32_0 = arith.constant 0 : i32
    %c0_i32_1 = arith.constant 0 : i32
    return %arg0, %c0_i32, %c0_i32_0 : i32, i32, i32
  }
  func.func @transform_1(%arg0: i32) -> (i32, i32) {
    %c0_i32 = arith.constant 0 : i32
    %c0_i32_0 = arith.constant 0 : i32
    %c0_i32_1 = arith.constant 0 : i32
    return %c0_i32, %c0_i32_0 : i32, i32
  }
  func.func @transform_2(%arg0: i32) -> (i32, i32) {
    %c0_i32 = arith.constant 0 : i32
    %c0_i32_0 = arith.constant 0 : i32
    %c0_i32_1 = arith.constant 0 : i32
    return %c0_i32, %c0_i32_0 : i32, i32
  }
  func.func @transform_3(%arg0: i32) -> (i32, i32) {
    %c0_i32 = arith.constant 0 : i32
    %c0_i32_0 = arith.constant 0 : i32
    %c0_i32_1 = arith.constant 0 : i32
    return %c0_i32, %c0_i32_0 : i32, i32
  }
  func.func @transform_4(%arg0: i32) -> (i32, i32) {
    %c0_i32 = arith.constant 0 : i32
    %c0_i32_0 = arith.constant 0 : i32
    %c0_i32_1 = arith.constant 0 : i32
    return %c0_i32, %c0_i32_0 : i32, i32
  }
  func.func @transform_5(%arg0: i32) -> (i32, i32) {
    %c0_i32 = arith.constant 0 : i32
    %c0_i32_0 = arith.constant 0 : i32
    %c0_i32_1 = arith.constant 0 : i32
    return %c0_i32, %c0_i32_0 : i32, i32
  }
  func.func @transform_6(%arg0: i32) -> (i32, i32) {
    %c0_i32 = arith.constant 0 : i32
    %c0_i32_0 = arith.constant 0 : i32
    %c0_i32_1 = arith.constant 0 : i32
    return %c0_i32, %c0_i32_0 : i32, i32
  }
}

</mosaic_0001>

<bundles_post_ra>
// kernel: forward.1
= control target key start
LH: loop header
LB: loop body
LE: loop exit
PB: predicated region body
PF: predicated region fallthrough
CT: control target
= control target key end

     0   :  { %s1123_s21 = smov 0   ;;  %s1269_s0 = inlined_call_operand.vmem [shape: f32[8,8,16], index: 0, kind: input, shape index: {}]   ;;  %s1270_s1 = inlined_call_operand.vmem [shape: f32[16,128], index: 1, kind: input, shape index: {}]   ;;  %s1271_s2 = inlined_call_operand.vmem [shape: f32[32,128], index: 2, kind: input, shape index: {}]   ;;  %s1272_s3 = inlined_call_operand.vmem [shape: f32[1,128], index: 3, kind: input, shape index: {}]   ;;  %s1273_s4 = inlined_call_operand.vmem [shape: f32[32,128], index: 4, kind: input, shape index: {}]   ;;  %s1274_s5 = inlined_call_operand.vmem [shape: f32[1,128], index: 5, kind: input, shape index: {}]   ;;  %s1275_s6 = inlined_call_operand.vmem [shape: f32[8,128], index: 6, kind: output, shape index: {}]  }
   0x1 LB: > { %s1129_s22 = sadd.s32 4294967295, %s1078_s21   ;;  %p906_p0 = scmp.ge.s32.totalorder %s1078_s21, 1  ;;  %s1078_s21 = sphi %s1123_s21, %s16_s21  }
   0x2   : > { %p208_p1 = scmp.lt.s32.totalorder %s1078_s21, 3 }
   0x4   : > { %p209_p2 = pnand %p906_p0, %p208_p1 }
   0x5   : > { %s907_s23 = sshll.u32 (!%p209_p2), %s1129_s22, 2  ;;  %p909_p4 = scmp.ne.s32.totalorder (!%p209_p2), %s1129_s22, 0 }
   0x6   : > { %212 = sbr.rel (%p209_p2) target bundleno = 2990 (0xbae), region = 44  ;;  %p234_p3 = scmp.lt.s32.totalorder (!%p209_p2), %s907_s23, 7 }
   0xb   : > { %s1277_s23 = smov (!%p234_p3, %s907_s23), 7  ;;  %242 = sbr.rel (%p909_p4) target bundleno = 18 (0x12), region = 48 }
   0xc   : > { %s908_s24 = sshll.u32 %s1277_s23, 3 }
   0xd   : > { %s1137_s27 = scalar_lea.vmem %s1269_s0, %s908_s24 }
  0x10   : > { %vm243_vm0 = vcmask 261120   ;;  %v1080_v0 = vmov 0.0  }
  0x11   : > { %244 = vst.msk [vmem:[#allocation3] sm:$0xff] %vm243_vm0, %v1080_v0  ;;  %245 = vst.msk [vmem:[#allocation4] sm:$0xff] %vm243_vm0, %v1080_v0 }
  0x12 PF: > { %v251_v1 = vld [vmem:[%s1270_s1 + $0x8] sm:$0xff]  ;;  %v1146_v2 = vld [vmem:[%s1271_s2 + $0x18] sm:$0xff]  ;;  %v250_v3 = vld [vmem:[%s1270_s1] sm:$0xff]  ;;  %v1081_v4 = vmov 0.0   ;;  %vm259_vm1 = vcmask 130048   ;;  %vm1082_vm2 = vmmov 0  }
  0x13   : > { %959 = vmatprep.subr.mxu0 %v251_v1  ;;  %969 = vmatprep.subr.mxu1 %v1081_v4  ;;  %v246_v5 = vld [vmem:[%s1137_s27] sm:$0xff]  ;;  %v1157_v6 = vld [vmem:[%s1271_s2 + $0x10] sm:$0xff]  ;;  %v247_v7 = vld [vmem:[%s1137_s27 + $0x8] sm:$0xff]  ;;  %vm368_vm3 = vcmask 261120   ;;  %s1083_s18 = smov 64   ;;  %s1084_s19 = smov 32  }
  0x14   : > { %960 = vmatpush3.msra.mxu0 %v251_v1  ;;  %970 = vmatpush3.msra.mxu1 %v1146_v2  ;;  %v1165_v8 = vld [vmem:[%s1271_s2 + $0x8] sm:$0xff]  ;;  %v1173_v9 = vld [vmem:[%s1271_s2] sm:$0xff]  ;;  %v248_v30 = vld [vmem:[%s1137_s27 + $0x10] sm:$0xff]  ;;  %s1085_s20 = smov 96   ;;  %p923_p5 = scmp.ne.s32.totalorder %s1129_s22, 1 }
  0x15   : > { %961 = vmatprep.subr.mxu0 %v250_v3  ;;  %971 = vmatprep.subr.mxu1 %v1081_v4  ;;  %v1203_v12 = vld [vmem:[%s1272_s3] ss:$0 sm:$0xff]  ;;  %v249_v31 = vld [vmem:[%s1137_s27 + $0x18] sm:$0xff] }
  0x16   : > { %962 = vmatpush3.msra.mxu0 %v250_v3  ;;  %963 = vmatprep.mubr.msk.f32.mxu0 %vm259_vm1, %v246_v5 }
  0x17   : > { %972 = vmatpush3.msra.mxu1 %v1157_v6  ;;  %964 = vmatmul.mubr.msk.f32.vlgmr.msra.gmra.mxu0 %vm259_vm1, %v247_v7 }
  0x18   : > { %973 = vmatprep.subr.mxu1 %v1081_v4  ;;  %977 = vmatprep.mubr.msk.f32.mxu1 %vm1082_vm2, %v1081_v4  ;;  %v365_v10 = vld [vmem:[#allocation3] sm:$0xff]  ;;  %v366_v19 = vld [vmem:[#allocation4] sm:$0xff] }
  0x19   : > { %974 = vmatpush3.msra.mxu1 %v1165_v8  ;;  %980 = vmatprep.subr.mxu0 %v1081_v4 }
  0x1a   : > { %975 = vmatprep.subr.mxu1 %v1081_v4  ;;  %981 = vmatpush3.msra.mxu0 %v1146_v2 }
  0x1b   : > { %976 = vmatpush3.msra.mxu1 %v1173_v9  ;;  %982 = vmatprep.subr.mxu0 %v1081_v4 }
  0x1c   : > { %978 = vmatmul.mubr.msk.f32.vlgmr.msra.gmra.mxu1 %vm368_vm3, %v365_v10  ;;  %983 = vmatpush3.msra.mxu0 %v1157_v6 }
  0x1d   : > { %984 = vmatprep.subr.mxu0 %v1081_v4  ;;  %991 = vmatprep.subr.mxu1 %v1081_v4 }
  0x1e   : > { %985 = vmatpush3.msra.mxu0 %v1165_v8  ;;  %992 = vmatpush3.msra.mxu1 %v1146_v2 }
  0x1f   : > { %986 = vmatprep.subr.mxu0 %v1081_v4  ;;  %993 = vmatprep.subr.mxu1 %v1081_v4 }
  0x20   : > { %987 = vmatpush3.msra.mxu0 %v1173_v9  ;;  %994 = vmatpush3.msra.mxu1 %v1157_v6 }
  0x21   : > { %995 = vmatprep.subr.mxu1 %v1081_v4  ;;  %999 = vmatprep.mubr.msk.f32.mxu1 %vm1082_vm2, %v1081_v4 }
  0x22   : > { %996 = vmatpush3.msra.mxu1 %v1165_v8  ;;  %1002 = vmatprep.subr.mxu0 %v1081_v4 }
  0x23   : > { %997 = vmatprep.subr.mxu1 %v1081_v4  ;;  %966 = vmatprep.mubr.msk.f32.mxu0 %vm259_vm1, %v248_v30 }
  0x24   : > { %998 = vmatpush3.msra.mxu1 %v1173_v9  ;;  %967 = vmatmul.mubr.msk.f32.gmra.mxu0 %vm259_vm1, %v249_v31 }
  0x25   : > { %988 = vmatprep.mubr.msk.f32.mxu0 %vm1082_vm2, %v1081_v4 }
  0xd7   : > { %v965_v11 = vpop.f32.mrf.mxu0 }
  0xd8   : > { %v344_v38 = vadd.f32 %v965_v11, %v1203_v12 }
  0xd9   : > { %v338_v13 = vpop.f32.mrf.mxu0 }
  0xda   : > { %v339_v14 = vadd.f32 %v1203_v12, %v338_v13 }
  0xdc   : > { %v438_v15 = vpop.f32.mrf.mxu1 }
  0xdd   : > { %v442_v16 = vadd.f32 %v438_v15, %v339_v14 }
  0xde   : > { %v979_v17 = vpop.f32.mrf.mxu1 }
  0xdf   : > { %1040 = vtanh.f32 %v442_v16  ;;  %v916_v20 = vmul.f32 -1.442695, %v442_v16 }
  0xe1   : > { %1042 = vpow2.f32 %v916_v20 }
  0xe4   : > { %v968_v36 = vpop.f32.mrf.mxu0 }
  0xe5   : > { %v354_v10 = vadd.f32 %v968_v36, %v1203_v12 }
  0xe6   : > { %v348_v37 = vpop.f32.mrf.mxu0 }
  0xe7   : > { %v349_v56 = vadd.f32 %v1203_v12, %v348_v37 }
  0xec   : > { %v1041_v18 = vpop.eup %1040 }
  0xed   : > { %456 = vrot.lane.b32.xlu0 %v1041_v18, %s1083_s18 }
  0xee   : > { %v1043_v21 = vpop.eup %1042 }
  0xef   : > { %v446_v22 = vadd.f32 1.0, %v1043_v21 }
  0xf1   : > { %451 = vrot.lane.b32.xlu0 %v366_v19, %s1084_s19  ;;  %1044 = vrcp.f32 %v446_v22 }
  0xfe   : > { %v1045_v23 = vpop.eup %1044 }
 0x15f   : > { %v457_v24 = vpop.permute.xlu0 %456 }
 0x160   : > { %v459_v25 = vmul.f32 %v1045_v23, %v457_v24 }
 0x162   : > { %461 = vrot.lane.b32.xlu1 %v459_v25, %s1084_s19 }
 0x163   : > { %v452_v26 = vpop.permute.xlu0 %451 }
 0x164   : > { %v454_v27 = vmul.f32 %v1045_v23, %v452_v26 }
 0x1d4   : > { %v462_v28 = vpop.permute.xlu1 %461 }
 0x1d5   : > { %v464_v29 = vadd.f32 %v462_v28, %v454_v27 }
 0x1d7   : > { %1046 = vtanh.f32 %v464_v29 }
 0x1e4   : > { %v1047_v32 = vpop.eup %1046 }
 0x1e5   : > { %467 = vrot.lane.b32.xlu1 %v1047_v32, %s1083_s18 }
 0x257   : > { %v468_v33 = vpop.permute.xlu1 %467 }
 0x258   : > { %v470_v34 = vmul.f32 %v1045_v23, %v468_v33 }
 0x25a   : > { %474 = vrot.lane.b32.xlu0 %v470_v34, %s1084_s19 }
 0x2cc   : > { %v475_v35 = vpop.permute.xlu0 %474 }
 0x2cd   : > { %989 = vmatmul.mubr.msk.f32.vlgmr.msra.gmra.mxu0 %vm368_vm3, %v475_v35 }
 0x2ce   : > { %1003 = vmatpush3.msra.mxu0 %v1146_v2  ;;  %1010 = vmatprep.mubr.msk.f32.mxu0 %vm1082_vm2, %v1081_v4 }
 0x2cf   : > { %1004 = vmatprep.subr.mxu0 %v1081_v4 }
 0x2d0   : > { %1005 = vmatpush3.msra.mxu0 %v1157_v6 }
 0x2d1   : > { %1006 = vmatprep.subr.mxu0 %v1081_v4 }
 0x2d2   : > { %1007 = vmatpush3.msra.mxu0 %v1165_v8 }
 0x2d3   : > { %1008 = vmatprep.subr.mxu0 %v1081_v4 }
 0x2d4   : > { %1009 = vmatpush3.msra.mxu0 %v1173_v9 }
 0x38d   : > { %v544_v39 = vpop.f32.mrf.mxu0 }
 0x38e   : > { %v548_v40 = vadd.f32 %v544_v39, %v344_v38 }
 0x38f   : > { %v990_v41 = vpop.f32.mrf.mxu0 }
 0x390   : > { %1048 = vtanh.f32 %v548_v40  ;;  %v918_v43 = vmul.f32 -1.442695, %v548_v40 }
 0x392   : > { %1050 = vpow2.f32 %v918_v43 }
 0x39d   : > { %v1049_v42 = vpop.eup %1048 }
 0x39e   : > { %558 = vrot.lane.b32.xlu1 %v1049_v42, %s1083_s18 }
 0x39f   : > { %v1051_v44 = vpop.eup %1050 }
 0x3a0   : > { %v552_v45 = vadd.f32 1.0, %v1051_v44 }
 0x3a2   : > { %1052 = vrcp.f32 %v552_v45 }
 0x3af   : > { %v1053_v46 = vpop.eup %1052 }
 0x3b0   : > { %v556_v49 = vmul.f32 %v1053_v46, %v464_v29 }
 0x410   : > { %v559_v47 = vpop.permute.xlu1 %558 }
 0x411   : > { %v561_v48 = vmul.f32 %v1053_v46, %v559_v47 }
 0x413   : > { %563 = vrot.lane.b32.xlu0 %v561_v48, %s1084_s19 }
 0x485   : > { %v564_v50 = vpop.permute.xlu0 %563 }
 0x486   : > { %v566_v51 = vadd.f32 %v564_v50, %v556_v49 }
 0x488   : > { %1054 = vtanh.f32 %v566_v51 }
 0x495   : > { %v1055_v52 = vpop.eup %1054 }
 0x496   : > { %569 = vrot.lane.b32.xlu1 %v1055_v52, %s1083_s18 }
 0x508   : > { %v570_v53 = vpop.permute.xlu1 %569 }
 0x509   : > { %v572_v54 = vmul.f32 %v1053_v46, %v570_v53 }
 0x50b   : > { %576 = vrot.lane.b32.xlu0 %v572_v54, %s1084_s19 }
 0x57d   : > { %v577_v55 = vpop.permute.xlu0 %576 }
 0x57e   : > { %1000 = vmatmul.mubr.msk.f32.vlgmr.msra.gmra.mxu1 %vm368_vm3, %v577_v55 }
 0x63e   : > { %v646_v57 = vpop.f32.mrf.mxu1 }
 0x63f   : > { %v650_v58 = vadd.f32 %v646_v57, %v349_v56 }
 0x640   : > { %v1001_v59 = vpop.f32.mrf.mxu1 }
 0x641   : > { %1056 = vtanh.f32 %v650_v58  ;;  %v920_v61 = vmul.f32 -1.442695, %v650_v58 }
 0x643   : > { %1058 = vpow2.f32 %v920_v61 }
 0x64e   : > { %v1057_v60 = vpop.eup %1056 }
 0x64f   : > { %660 = vrot.lane.b32.xlu1 %v1057_v60, %s1083_s18 }
 0x650   : > { %v1059_v62 = vpop.eup %1058 }
 0x651   : > { %v654_v63 = vadd.f32 1.0, %v1059_v62 }
 0x653   : > { %1060 = vrcp.f32 %v654_v63 }
 0x660   : > { %v1061_v0 = vpop.eup %1060 }
 0x661   : > { %v658_v3 = vmul.f32 %v1061_v0, %v566_v51 }
 0x6c1   : > { %v661_v1 = vpop.permute.xlu1 %660 }
 0x6c2   : > { %v663_v2 = vmul.f32 %v1061_v0, %v661_v1 }
 0x6c4   : > { %665 = vrot.lane.b32.xlu0 %v663_v2, %s1084_s19 }
 0x736   : > { %v666_v4 = vpop.permute.xlu0 %665 }
 0x737   : > { %v668_v5 = vadd.f32 %v666_v4, %v658_v3 }
 0x739   : > { %1062 = vtanh.f32 %v668_v5 }
 0x746   : > { %v1063_v6 = vpop.eup %1062 }
 0x747   : > { %671 = vrot.lane.b32.xlu1 %v1063_v6, %s1083_s18 }
 0x7b9   : > { %v672_v7 = vpop.permute.xlu1 %671 }
 0x7ba   : > { %v674_v8 = vmul.f32 %v1061_v0, %v672_v7 }
 0x7bc   : > { %678 = vrot.lane.b32.xlu0 %v674_v8, %s1084_s19 }
 0x82e   : > { %v679_v9 = vpop.permute.xlu0 %678 }
 0x82f   : > { %1011 = vmatmul.mubr.msk.f32.vlgmr.msra.gmra.mxu0 %vm368_vm3, %v679_v9 }
 0x8ef   : > { %v748_v11 = vpop.f32.mrf.mxu0 }
 0x8f0   : > { %v752_v13 = vadd.f32 %v748_v11, %v354_v10 }
 0x8f1   : > { %v1012_v14 = vpop.f32.mrf.mxu0 }
 0x8f2   : > { %1064 = vtanh.f32 %v752_v13  ;;  %v922_v16 = vmul.f32 -1.442695, %v752_v13 }
 0x8f4   : > { %1066 = vpow2.f32 %v922_v16 }
 0x8ff   : > { %v1065_v15 = vpop.eup %1064 }
 0x900   : > { %762 = vrot.lane.b32.xlu1 %v1065_v15, %s1083_s18 }
 0x901   : > { %v1067_v17 = vpop.eup %1066 }
 0x902   : > { %v756_v18 = vadd.f32 1.0, %v1067_v17 }
 0x904   : > { %1068 = vrcp.f32 %v756_v18 }
 0x911   : > { %v1069_v19 = vpop.eup %1068 }
 0x912   : > { %v760_v22 = vmul.f32 %v1069_v19, %v668_v5 }
 0x972   : > { %v763_v20 = vpop.permute.xlu1 %762 }
 0x973   : > { %v765_v21 = vmul.f32 %v1069_v19, %v763_v20 }
 0x975   : > { %767 = vrot.lane.b32.xlu0 %v765_v21, %s1084_s19 }
 0x9e7   : > { %v768_v23 = vpop.permute.xlu0 %767 }
 0x9e8   : > { %v770_v12 = vadd.f32 %v768_v23, %v760_v22 }
 0x9ea   : > { %1070 = vtanh.f32 %v770_v12 }
 0x9f7   : > { %v1071_v24 = vpop.eup %1070 }
 0x9f8   : > { %773 = vrot.lane.b32.xlu1 %v1071_v24, %s1083_s18 }
 0x9fc   : > { %783 = vrot.lane.b32.xlu1 %v770_v12, %s1085_s20 }
 0xa6a   : > { %v774_v25 = vpop.permute.xlu1 %773 }
 0xa6b   : > { %v776_v26 = vmul.f32 %v1069_v19, %v774_v25 }
 0xa6d   : > { %778 = vrot.lane.b32.xlu0 %v776_v26, %s1084_s19 }
 0xa6e   : > { %v784_v27 = vpop.permute.xlu1 %783 }
 0xa6f   : > { %786 = vst.msk [vmem:[#allocation4] sm:$0xff] %vm368_vm3, %v784_v27 }
 0xadc   : > { %790 = sbr.rel (%p923_p5) target bundleno = 2990 (0xbae), region = 52 }
 0xadf   : > { %v779_v28 = vpop.permute.xlu0 %778 }
 0xae0   : > { %781 = vst.msk [vmem:[#allocation3] sm:$0xff] %vm368_vm3, %v779_v28 }
 0xae1   : > { %v794_v29 = vld [vmem:[%s1273_s4 + $0x18] sm:$0xff]  ;;  %v1086_v30 = vmov 0.0   ;;  %v793_v31 = vld [vmem:[%s1273_s4 + $0x10] sm:$0xff]  ;;  %vm1087_vm4 = vmmov 0   ;;  %v792_v32 = vld [vmem:[%s1273_s4 + $0x8] sm:$0xff] }
 0xae2   : > { %1013 = vmatprep.subr.mxu0 %v1086_v30  ;;  %1021 = vmatprep.mubr.msk.f32.mxu0 %vm1087_vm4, %v1086_v30  ;;  %v791_v33 = vld [vmem:[%s1273_s4] sm:$0xff] }
 0xae3   : > { %1014 = vmatpush3.msra.mxu0 %v794_v29  ;;  %v924_v34 = vld [vmem:[%s1274_s5] ss:$0 sm:$0xff] }
 0xae4   : > { %1015 = vmatprep.subr.mxu0 %v1086_v30 }
 0xae5   : > { %1016 = vmatpush3.msra.mxu0 %v793_v31 }
 0xae6   : > { %1017 = vmatprep.subr.mxu0 %v1086_v30 }
 0xae7   : > { %1018 = vmatpush3.msra.mxu0 %v792_v32 }
 0xae8   : > { %1019 = vmatprep.subr.mxu0 %v1086_v30 }
 0xae9   : > { %1020 = vmatpush3.msra.mxu0 %v791_v33 }
 0xaea   : > { %1022 = vmatmul.mubr.msk.f32.vlgmr.msra.gmra.mxu0 %vm368_vm3, %v779_v28 }
 0xbaa   : > { %v870_v35 = vpop.f32.mrf.mxu0 }
 0xbab   : > { %v871_v36 = vadd.f32 %v924_v34, %v870_v35 }
 0xbac   : > { %v1023_v37 = vpop.f32.mrf.mxu0 }
 0xbad   : > { %874 = vst [vmem:[%s1275_s6] sm:$0xff] %v871_v36 }
 0xbae PF: > { %s16_s21 = sadd.s32 1, %s1078_s21  }
 0xbaf   : > { %p13_p6 = scmp.ge.s32.totalorder %s16_s21, 4  }
 0xbb1   :  { %15 = sbr.rel (!%p13_p6) target bundleno = 1 (0x1), region = 81 }

</bundles_post_ra>
